<compile_context>
chip_gen: v6e
topology: v6e:2x2x1
jax: 0.10.0
libtpu: 0.0.40
codegen_flags: <defaults>
</compile_context>

<pallas_src>
import math

import jax
import jax.numpy as jnp
from jax.experimental import pallas as pl
from jax.experimental.pallas import tpu as pltpu


# ----------------------------------------------------------------------------
# Hardware queries (defensive: fall back to conservative defaults).
# ----------------------------------------------------------------------------
def _device_kind():
    try:
        return jax.devices()[0].device_kind.lower()
    except Exception:
        return ""


def _is_v7():
    k = _device_kind()
    return ("v7" in k) or ("7x" in k)


def _vmem_capacity_bytes():
    try:
        info = pltpu.get_tpu_info()
        cap = getattr(info, "vmem_capacity_bytes", None)
        if cap:
            return int(cap)
    except Exception:
        pass
    return (64 << 20) if _is_v7() else (128 << 20)


def _target_block_bytes():
    # v7x: ~3.2 TB/s per TC -> 2 MiB blocks are ~25-30% per-step overhead;
    # 8 MiB blocks cut that to ~7%.  v5e/v6e: 4 MiB is already ~roofline.
    return (8 << 20) if _is_v7() else (4 << 20)


def _vmem_limit(footprint_bytes):
    cap = _vmem_capacity_bytes()
    limit = max(int(footprint_bytes) + (2 << 20), 16 << 20)
    return int(min(limit, cap - (8 << 20)))


def _sublane_multiple(dtype):
    # 8 rows/vreg f32, 16 bf16, 32 int8/fp8 (dtype-aware sublane packing).
    return max(8, 32 // max(1, jnp.dtype(dtype).itemsize))


def _round_up(x, m):
    return -(-x // m) * m


# ----------------------------------------------------------------------------
# Tile selection.
# ----------------------------------------------------------------------------
def _pick_lane_tile(lane, min_rows, itemsize, target_bytes):
    """Last-dim tile: full extent, or a multiple of 128 small enough that even
    `min_rows` sublane-rows of it stay within the per-block budget."""
    if lane <= 128:
        return int(lane)
    cand = (target_bytes // (min_rows * itemsize)) // 128 * 128
    if cand >= lane:
        return int(lane)
    return int(max(128, cand))


def _pick_tiles_2d(rows, lane, itemsize, sub, target_bytes):
    lane_tile = _pick_lane_tile(lane, sub, itemsize, target_bytes)
    t = max(1, target_bytes // (lane_tile * itemsize))
    if t >= rows or rows <= sub:
        row_tile = rows
    else:
        row_tile = max(sub, (t // sub) * sub)
    # Megacore: prefer >= 2 grid steps when the whole array fits one block.
    if row_tile >= rows and lane_tile >= lane and rows > sub:
        half = _round_up((rows + 1) // 2, sub)
        if 0 < half < rows:
            row_tile = half
    return int(row_tile), int(lane_tile)


def _pick_tiles_3d(n, c, hw, itemsize, sub, target_bytes):
    l_tile = _pick_lane_tile(hw, sub, itemsize, target_bytes)
    wb_row = 2 * 128 * 4  # padded f32 weight+bias bytes per channel row in VMEM
    t_c = max(1, target_bytes // (l_tile * itemsize + wb_row))
    if t_c >= c or c <= sub:
        c_tile = c
    else:
        c_tile = max(sub, (t_c // sub) * sub)
    t_n = max(1, target_bytes // (c_tile * l_tile * itemsize))
    n_tile = min(n, int(t_n))
    # Megacore: prefer >= 2 grid steps.
    if n_tile >= n and c_tile >= c and l_tile >= hw and n >= 2:
        n_tile = (n + 1) // 2
    return int(n_tile), int(c_tile), int(l_tile)


# ----------------------------------------------------------------------------
# Kernel body (rank-agnostic: weight/bias broadcast against the x tile).
# ----------------------------------------------------------------------------
def _dyt_kernel(alpha_ref, w_ref, b_ref, x_ref, o_ref):
    # alpha_ref: (1, 1) f32 scalar in SMEM.
    # w_ref/b_ref: (1, L) or (1, c_tile, 1) f32 in VMEM (broadcast in-kernel).
    # x_ref/o_ref: the data tile; f32 math, cast on store.
    alpha = alpha_ref[0, 0]
    y = jnp.tanh(alpha * x_ref[...].astype(jnp.float32))   # EUP tanh in f32
    o_ref[...] = (y * w_ref[...] + b_ref[...]).astype(o_ref.dtype)


# ----------------------------------------------------------------------------
# pallas_call wrappers.
# ----------------------------------------------------------------------------
def _dyt_rows_call(x2d, alpha_sc, w2d, b2d, *, target_block_bytes=None,
                   out_dtype=None):
    """x2d: (rows, lane); w2d/b2d: (1, lane) f32 row-broadcast."""
    rows, lane = x2d.shape
    out_dtype = out_dtype or x2d.dtype                 # no f32 promotion
    itemsize = jnp.dtype(x2d.dtype).itemsize
    sub = _sublane_multiple(x2d.dtype)
    target = target_block_bytes or _target_block_bytes()
    row_tile, lane_tile = _pick_tiles_2d(rows, lane, itemsize, sub, target)
    grid = (pl.cdiv(rows, row_tile), pl.cdiv(lane, lane_tile))

    x_blk = row_tile * lane_tile * max(itemsize, jnp.dtype(out_dtype).itemsize)
    wb_blk = 8 * _round_up(max(lane_tile, 128), 128) * 4
    vmem_limit = _vmem_limit(4 * x_blk + 4 * wb_blk)

    return pl.pallas_call(
        _dyt_kernel,
        out_shape=jax.ShapeDtypeStruct((rows, lane), out_dtype),
        grid=grid,
        in_specs=[
            pl.BlockSpec(memory_space=pltpu.MemorySpace.SMEM),          # alpha
            pl.BlockSpec((1, lane_tile), lambda i, j: (0, j)),          # weight
            pl.BlockSpec((1, lane_tile), lambda i, j: (0, j)),          # bias
            pl.BlockSpec((row_tile, lane_tile), lambda i, j: (i, j)),   # x
        ],
        out_specs=pl.BlockSpec((row_tile, lane_tile), lambda i, j: (i, j)),
        compiler_params=pltpu.CompilerParams(
            dimension_semantics=("parallel", "parallel"),
            vmem_limit_bytes=vmem_limit),
    )(alpha_sc, w2d, b2d, x2d)


def _dyt_nchw_call(x3d, alpha_sc, w3, b3, *, target_block_bytes=None,
                   out_dtype=None):
    """x3d: (N, C, H*W) view of NCHW; w3/b3: (1, C, 1) f32 per-channel column."""
    n, c, hw = x3d.shape
    out_dtype = out_dtype or x3d.dtype                 # no f32 promotion
    itemsize = jnp.dtype(x3d.dtype).itemsize
    sub = _sublane_multiple(x3d.dtype)
    target = target_block_bytes or _target_block_bytes()
    n_tile, c_tile, l_tile = _pick_tiles_3d(n, c, hw, itemsize, sub, target)
    grid = (pl.cdiv(n, n_tile), pl.cdiv(c, c_tile), pl.cdiv(hw, l_tile))

    x_blk = n_tile * c_tile * l_tile * max(itemsize,
                                           jnp.dtype(out_dtype).itemsize)
    wb_blk = _round_up(max(c_tile, 8), 8) * 128 * 4
    vmem_limit = _vmem_limit(4 * x_blk + 4 * wb_blk)

    return pl.pallas_call(
        _dyt_kernel,
        out_shape=jax.ShapeDtypeStruct((n, c, hw), out_dtype),
        grid=grid,
        in_specs=[
            pl.BlockSpec(memory_space=pltpu.MemorySpace.SMEM),              # alpha
            pl.BlockSpec((1, c_tile, 1), lambda a, i, j: (0, i, 0)),        # weight
            pl.BlockSpec((1, c_tile, 1), lambda a, i, j: (0, i, 0)),        # bias
            pl.BlockSpec((n_tile, c_tile, l_tile), lambda a, i, j: (a, i, j)),
        ],
        out_specs=pl.BlockSpec((n_tile, c_tile, l_tile),
                               lambda a, i, j: (a, i, j)),
        compiler_params=pltpu.CompilerParams(
            dimension_semantics=("parallel", "parallel", "parallel"),
            vmem_limit_bytes=vmem_limit),
    )(alpha_sc, w3, b3, x3d)


# ----------------------------------------------------------------------------
# Module wrapper (forward only).
# ----------------------------------------------------------------------------
class DynamicTanhPallas:
    """JAX/Pallas port of the PyTorch DynamicTanh module (forward pass).

    out_dtype=None (default) keeps the input dtype (fast path, recommended);
    pass out_dtype=jnp.float32 to mimic PyTorch's promotion with f32 params.
    """

    def __init__(self, normalized_shape, channels_last, alpha_init_value=0.5,
                 out_dtype=None):
        self.normalized_shape = int(normalized_shape)
        self.channels_last = bool(channels_last)
        self.out_dtype = out_dtype
        self.alpha = jnp.full((1,), alpha_init_value, dtype=jnp.float32)
        self.weight = jnp.ones((self.normalized_shape,), dtype=jnp.float32)
        self.bias = jnp.zeros((self.normalized_shape,), dtype=jnp.float32)
        self._wb_cache = {}            # cached tiled/reshaped weight & bias

    def invalidate_cache(self):
        """Call after reassigning self.weight / self.bias."""
        self._wb_cache = {}

    def _wb_row(self, k):
        key = ("row", int(k))
        if key not in self._wb_cache:
            c = self.normalized_shape
            w = jnp.tile(self.weight.astype(jnp.float32), k).reshape(1, k * c)
            b = jnp.tile(self.bias.astype(jnp.float32), k).reshape(1, k * c)
            self._wb_cache[key] = (w, b)
        return self._wb_cache[key]

    def _wb_col(self):
        key = ("col",)
        if key not in self._wb_cache:
            c = self.normalized_shape
            self._wb_cache[key] = (
                self.weight.astype(jnp.float32).reshape(1, c, 1),
                self.bias.astype(jnp.float32).reshape(1, c, 1))
        return self._wb_cache[key]

    def __call__(self, x):
        c = self.normalized_shape
        alpha_sc = self.alpha.astype(jnp.float32).reshape(1, 1)
        out_dtype = self.out_dtype

        if self.channels_last:
            # x: (..., C)
            assert x.shape[-1] == c
            orig_shape = x.shape
            r = x.size // c
            k = math.lcm(c, 128) // c
            if k == 1:
                y = _dyt_rows_call(x.reshape(r, c), alpha_sc, *self._wb_row(1),
                                   out_dtype=out_dtype)
                return y.reshape(orig_shape)

            bulk = (r // k) * k
            if bulk == r:
                # Fully lane-densified: fold k channel rows -> L = k*C lanes.
                y = _dyt_rows_call(x.reshape(r // k, k * c), alpha_sc,
                                   *self._wb_row(k), out_dtype=out_dtype)
                return y.reshape(orig_shape)
            if bulk == 0:
                # Tiny tensor: masked stores are negligible here.
                y = _dyt_rows_call(x.reshape(r, c), alpha_sc, *self._wb_row(1),
                                   out_dtype=out_dtype)
                return y.reshape(orig_shape)

            # Rare R % k != 0 case: bulk (lane-dense) + tiny tail, so >99% of
            # the data keeps full-width unmasked stores.  The slice/concat adds
            # one extra HBM pass but beats masked stores at C/128 utilization.
            x_flat = x.reshape(-1)
            y_bulk = _dyt_rows_call(
                x_flat[: bulk * c].reshape(bulk // k, k * c), alpha_sc,
                *self._wb_row(k), out_dtype=out_dtype)
            y_tail = _dyt_rows_call(
                x_flat[bulk * c:].reshape(r - bulk, c), alpha_sc,
                *self._wb_row(1), out_dtype=out_dtype)
            y = jnp.concatenate([y_bulk.reshape(-1), y_tail.reshape(-1)])
            return y.reshape(orig_shape)

        # channels_first: x is (N, C, H, W) -> free view as (N, C, H*W),
        # weight/bias as a tiny (1, C, 1) column broadcast in-kernel.
        assert x.ndim == 4 and x.shape[1] == c
        n, _, h, w = x.shape
        w3, b3 = self._wb_col()
        y = _dyt_nchw_call(x.reshape(n, c, h * w), alpha_sc, w3, b3,
                           out_dtype=out_dtype)
        return y.reshape(n, c, h, w)


# ----------------------------------------------------------------------------
# Reference + self-test.
# ----------------------------------------------------------------------------
def _reference(x, alpha, weight, bias, channels_last):
    xf = x.astype(jnp.float32)
    y = jnp.tanh(alpha * xf)
    if channels_last:
        y = y * weight + bias
    else:
        y = y * weight[:, None, None] + bias[:, None, None]
    return y.astype(x.dtype)


if __name__ == "__main__":
    key = jax.random.PRNGKey(0)
    k1, k2, k3, k4, k5, k6 = jax.random.split(key, 6)

    # --- channels_first: NCHW, H*W multiple of 128 ---------------------------
    x_cf = jax.random.normal(k1, (2, 4, 16, 16), dtype=jnp.float32)
    mod_cf = DynamicTanhPallas(normalized_shape=4, channels_last=False)
    mod_cf.weight = jnp.linspace(0.5, 1.5, 4, dtype=jnp.float32)
    mod_cf.bias = jnp.linspace(-0.1, 0.1, 4, dtype=jnp.float32)
    mod_cf.invalidate_cache()
    y_cf = jax.block_until_ready(mod_cf(x_cf))
    ref_cf = _reference(x_cf, mod_cf.alpha[0], mod_cf.weight, mod_cf.bias, False)
    assert y_cf.shape == x_cf.shape and y_cf.dtype == x_cf.dtype
    assert jnp.allclose(y_cf, ref_cf, atol=1e-5, rtol=1e-5)

    # --- channels_first: small non-128 spatial (7x7) -------------------------
    x_cf2 = jax.random.normal(k2, (2, 4, 7, 7), dtype=jnp.float32)
    y_cf2 = jax.block_until_ready(mod_cf(x_cf2))
    ref_cf2 = _reference(x_cf2, mod_cf.alpha[0], mod_cf.weight, mod_cf.bias, False)
    assert jnp.allclose(y_cf2, ref_cf2, atol=1e-5, rtol=1e-5)

    # --- channels_last f32, lane-densified (C=32 -> L=128) -------------------
    x_cl = jax.random.normal(k3, (2, 8, 8, 32), dtype=jnp.float32)
    mod_cl = DynamicTanhPallas(normalized_shape=32, channels_last=True)
    mod_cl.weight = jnp.linspace(0.9, 1.1, 32, dtype=jnp.float32)
    mod_cl.bias = jnp.linspace(-0.05, 0.05, 32, dtype=jnp.float32)
    mod_cl.invalidate_cache()
    y_cl = jax.block_until_ready(mod_cl(x_cl))
    ref_cl = _reference(x_cl, mod_cl.alpha[0], mod_cl.weight, mod_cl.bias, True)
    assert y_cl.shape == x_cl.shape and y_cl.dtype == x_cl.dtype
    assert jnp.allclose(y_cl, ref_cl, atol=1e-5, rtol=1e-5)

    # --- channels_last bf16: output dtype is preserved (no f32 promotion) ----
    x_bf = jax.random.normal(k4, (2, 4, 8, 32), dtype=jnp.bfloat16)
    y_bf = jax.block_until_ready(mod_cl(x_bf))
    ref_bf = _reference(x_bf, mod_cl.alpha[0], mod_cl.weight, mod_cl.bias, True)
    assert y_bf.dtype == jnp.bfloat16
    assert jnp.allclose(y_bf.astype(jnp.float32), ref_bf.astype(jnp.float32),
                        atol=2e-2, rtol=2e-2)

    # --- channels_last with R % k != 0: bulk + tail split ---------------------
    x_bt = jax.random.normal(k5, (3, 5, 32), dtype=jnp.float32)   # R=15, k=4
    y_bt = jax.block_until_ready(mod_cl(x_bt))
    ref_bt = _reference(x_bt, mod_cl.alpha[0], mod_cl.weight, mod_cl.bias, True)
    assert y_bt.shape == x_bt.shape
    assert jnp.allclose(y_bt, ref_bt, atol=1e-5, rtol=1e-5)

    # --- direct 2-D call: tiny block budget -> row + lane tiling, masked tail -
    x3 = jax.random.normal(k6, (20, 256), dtype=jnp.float32)
    w3 = jnp.linspace(0.8, 1.2, 256, dtype=jnp.float32)
    b3 = jnp.linspace(-0.2, 0.2, 256, dtype=jnp.float32)
    alpha3 = jnp.full((1, 1), 0.7, dtype=jnp.float32)
    y3 = jax.block_until_ready(
        _dyt_rows_call(x3, alpha3, w3.reshape(1, 256), b3.reshape(1, 256),
                       target_block_bytes=8 * 128 * 4))   # grid = (3, 2)
    ref3 = jnp.tanh(0.7 * x3) * w3 + b3
    assert jnp.allclose(y3, ref3, atol=1e-5, rtol=1e-5)

    print("KERNEL_OK")
</pallas_src>

<mosaic_0001>
module attributes {stable_mosaic.version = 11 : i64} {
  func.func @_dyt_kernel(%arg0: i32, %arg1: i32, %arg2: i32, %arg3: memref<1x1xf32, #tpu.memory_space<smem>>, %arg4: memref<1x4x1xf32, #tpu.memory_space<vmem>>, %arg5: memref<1x4x1xf32, #tpu.memory_space<vmem>>, %arg6: memref<1x4x256xf32, #tpu.memory_space<vmem>>, %arg7: memref<1x4x256xf32, #tpu.memory_space<vmem>>) attributes {dimension_semantics = [#tpu.dimension_semantics<parallel>, #tpu.dimension_semantics<parallel>, #tpu.dimension_semantics<parallel>], iteration_bounds = array<i64: 2, 1, 1>, scalar_prefetch = 0 : i64, scratch_operands = 0 : i64, tpu.core_type = #tpu.core_type<tc>, window_params = [{transform_indices = @transform_0, window_bounds = array<i64: 1, 1>}, {transform_indices = @transform_1, window_bounds = array<i64: 1, 4, 1>}, {transform_indices = @transform_2, window_bounds = array<i64: 1, 4, 1>}, {transform_indices = @transform_3, window_bounds = array<i64: 1, 4, 256>}, {transform_indices = @transform_4, window_bounds = array<i64: 1, 4, 256>}]} {
    %c0 = arith.constant 0 : index
    %c0_0 = arith.constant 0 : index
    %0 = memref.load %arg3[%c0, %c0_0] : memref<1x1xf32, #tpu.memory_space<smem>>
    %c0_1 = arith.constant 0 : index
    %c0_2 = arith.constant 0 : index
    %c0_3 = arith.constant 0 : index
    %1 = vector.load %arg6[%c0_1, %c0_2, %c0_3] : memref<1x4x256xf32, #tpu.memory_space<vmem>>, vector<1x4x256xf32>
    %2 = vector.broadcast %0 : f32 to vector<1x4x256xf32>
    %3 = arith.mulf %2, %1 : vector<1x4x256xf32>
    %4 = math.tanh %3 : vector<1x4x256xf32>
    %c0_4 = arith.constant 0 : index
    %c0_5 = arith.constant 0 : index
    %c0_6 = arith.constant 0 : index
    %5 = vector.load %arg4[%c0_4, %c0_5, %c0_6] : memref<1x4x1xf32, #tpu.memory_space<vmem>>, vector<1x4x1xf32>
    %6 = vector.broadcast %5 : vector<1x4x1xf32> to vector<1x4x256xf32>
    %7 = arith.mulf %4, %6 : vector<1x4x256xf32>
    %c0_7 = arith.constant 0 : index
    %c0_8 = arith.constant 0 : index
    %c0_9 = arith.constant 0 : index
    %8 = vector.load %arg5[%c0_7, %c0_8, %c0_9] : memref<1x4x1xf32, #tpu.memory_space<vmem>>, vector<1x4x1xf32>
    %9 = vector.broadcast %8 : vector<1x4x1xf32> to vector<1x4x256xf32>
    %10 = arith.addf %7, %9 : vector<1x4x256xf32>
    %c0_10 = arith.constant 0 : index
    %c0_11 = arith.constant 0 : index
    %c0_12 = arith.constant 0 : index
    %11 = vector.load %arg7[%c0_10, %c0_11, %c0_12] : memref<1x4x256xf32, #tpu.memory_space<vmem>>, vector<1x4x256xf32>
    tpu.vector_store %arg7[%c0_10, %c0_11, %c0_12], %10 {strides = array<i32>} : memref<1x4x256xf32, #tpu.memory_space<vmem>>, vector<1x4x256xf32>,
    return
  }
  func.func @transform_0(%arg0: i32, %arg1: i32, %arg2: i32) -> (i32, i32) {
    %c0_i32 = arith.constant 0 : i32
    %c0_i32_0 = arith.constant 0 : i32
    %c0_i32_1 = arith.constant 0 : i32
    return %c0_i32, %c0_i32_0 : i32, i32
  }
  func.func @transform_1(%arg0: i32, %arg1: i32, %arg2: i32) -> (i32, i32, i32) {
    %c0_i32 = arith.constant 0 : i32
    %c0_i32_0 = arith.constant 0 : i32
    %c0_i32_1 = arith.constant 0 : i32
    return %c0_i32, %arg1, %c0_i32_0 : i32, i32, i32
  }
  func.func @transform_2(%arg0: i32, %arg1: i32, %arg2: i32) -> (i32, i32, i32) {
    %c0_i32 = arith.constant 0 : i32
    %c0_i32_0 = arith.constant 0 : i32
    %c0_i32_1 = arith.constant 0 : i32
    return %c0_i32, %arg1, %c0_i32_0 : i32, i32, i32
  }
  func.func @transform_3(%arg0: i32, %arg1: i32, %arg2: i32) -> (i32, i32, i32) {
    %c0_i32 = arith.constant 0 : i32
    return %arg0, %arg1, %arg2 : i32, i32, i32
  }
  func.func @transform_4(%arg0: i32, %arg1: i32, %arg2: i32) -> (i32, i32, i32) {
    %c0_i32 = arith.constant 0 : i32
    return %arg0, %arg1, %arg2 : i32, i32, i32
  }
}

</mosaic_0001>

<bundles_post_ra>
// kernel: tpu_custom_call.1
= control target key start
LH: loop header
LB: loop body
LE: loop exit
PB: predicated region body
PF: predicated region fallthrough
CT: control target
= control target key end

     0   :  { %s824_s0 = inlined_call_operand.<no memory space> [shape: f32[1,1], index: 0, kind: input, shape index: {}]   ;;  %s825_s1 = inlined_call_operand.vmem [shape: f32[1,4,1], index: 1, kind: input, shape index: {}]   ;;  %s826_s2 = inlined_call_operand.vmem [shape: f32[1,4,1], index: 2, kind: input, shape index: {}]   ;;  %s827_s3 = inlined_call_operand.hbm [shape: f32[2,4,256], index: 3, kind: input, shape index: {}]   ;;  %s828_s4 = inlined_call_operand.hbm [shape: f32[2,4,256], index: 4, kind: output, shape index: {}]  }
   0x1   :  { %9 = sst [smem:[#allocation2]] %s824_s0 }
   0x2   :  { %10 = vsyncpa [#allocation4], 0 }
   0x3   :  { %12 = vsyncpa [#allocation4 + $0x1], 0 }
   0x4   :  { %13 = vsyncpa [#allocation5], 0 }
   0x5   :  { %15 = vsyncpa [#allocation5 + $0x1], 0  ;;  %s684_s17 = smov 0   ;;  %s686_s18 = smov 0  }
   0x6   :  { %s688_s19 = smov 0   ;;  %s690_s20 = smov 0  }
   0x7   :  { %s692_s21 = smov 0   ;;  %s694_s22 = smov 0  }
   0x8 LB: > { %s456_s0 = sadd.s32 4294967295, %s650_s22   ;;  %s457_s23 = sadd.s32 4294967294, %s650_s22   ;;  %s650_s22 = sphi %s694_s22, %s21_s22   ;;  %s646_s21 = sphi %s692_s21, %s840_s21   ;;  %s642_s20 = sphi %s690_s20, %s839_s20   ;;  %s638_s19 = sphi %s688_s19, %s838_s19   ;;  %s634_s18 = sphi %s686_s18, %s837_s18   ;;  %s630_s17 = sphi %s684_s17, %s836_s17  }
   0x9   : > { %s40_s24 = sadd.s32 1, %s646_s21  ;;  %s124_s25 = sadd.s32 1, %s638_s19 }
   0xa   : > { %p42_p0 = scmp.ge.s32.totalorder %s40_s24, 2  ;;  %p131_p1 = scmp.ne.s32.totalorder %s638_s19, %s634_s18 }
   0xb   : > { %p132_p2 = scmp.eq.s32.totalorder %s650_s22, 0  ;;  %p137_p3 = scmp.ne.s32.totalorder %s634_s18, %s630_s17 }
   0xc   : > { %s842_s24 = smov (%p42_p0, %s40_s24), 0  ;;  %p138_p5 = scmp.eq.s32.totalorder %s456_s0, 0 }
   0xd   : > { %p725_p4 = por %p132_p2, %p131_p1  ;;  %s117_s27 = ssub.s32 %s646_s21, %s842_s24 }
   0xe   : > { %p165_p6 = scmp.eq.s32.totalorder %s456_s0, 1  ;;  %p122_p7 = scmp.eq.s32.totalorder %s117_s27, 0 }
   0xf   : > { %p731_p8 = por %p138_p5, %p137_p3  ;;  %p171_p10 = scmp.eq.s32.totalorder %s457_s23, 1 }
  0x10   : > { %p735_p9 = por %p165_p6, %p131_p1  ;;  %p487_p13 = scmp.lt.s32.totalorder %s650_s22, 2 }
  0x11   : > { %s740_s30 = scalar_select %p122_p7, %s638_s19, %s124_s25  }
  0x12   : > { %p742_p11 = por %p171_p10, %p137_p3  ;;  %s208_s6 = sand.u32 1, %s638_s19  }
  0x13   : > { %s462_s7 = sshll.u32 %s208_s6, 3  ;;  %s473_s8 = sshll.u32 %s646_s21, 7 }
  0x14   : > { %s832_s5 = scalar_select %p742_p11, 1, 0 }
  0x15   : > { %s222_s11 = scalar_lea.hbm %s827_s3, %s473_s8  ;;  %s212_s12 = scalar_lea.vmem [#allocation3], %s462_s7 }
  0x16   : > { %s224_s13 = sshll.u32 %s212_s12, 4  ;;  %p755_p0 = pnand %p487_p13, %p725_p4  ;;  %s225_s13 = int_to_ptr.vmem [resolvable:$true] %s224_s13 }
  0x17   : > { %p465_p1 = scmp.ge.s32.totalorder %s650_s22, 1  ;;  %p229_p2 = scmp.lt.s32.totalorder %s650_s22, 3 }
  0x18   : > { %s209_s15 = scalar_lea.sflag [#allocation4], %s208_s6  ;;  %p544_p3 = pneg %p755_p0 }
  0x19   : > { %s555_s16 = scalar_lea.vmem %s225_s13, 128  ;;  %s652_s0 = smov [#allocation3]  }
  0x1a   : > { %p556_p5 = scmp.ne.s32.totalorder %s225_s13, %s555_s16  ;;  %s560_s23 = sshll.u32 %s652_s0, 4  ;;  %s561_s23 = int_to_ptr.vmem [resolvable:$false] %s560_s23 }
  0x1b   : > { %s562_s25 = scalar_lea.vmem %s561_s23, 256  ;;  %p563_p10 = scmp.lt.s32.totalorder %s225_s13, %s561_s23 }
  0x1c   : > { %p558_p6 = pnand %p556_p5, %p544_p3  ;;  %p564_p12 = scmp.lt.s32.totalorder %s562_s25, %s555_s16 }
  0x1e   : > { %p559_p7 = pneg %p558_p6  ;;  %p565_p4 = por %p564_p12, %p563_p10 }
  0x20   : > { %p566_p13 = pnand %p565_p4, %p559_p7 }
  0x22   : > { %569 = shalt.err (!%p566_p13)
}
  0x23   : > { %482 = dma.hbm_to_vmem [thread:$0]  (!%p755_p0), %s222_s11, 128, %s225_s13, %s209_s15  }
  0x24   : > { %p230_p11 = pnand %p465_p1, %p229_p2 }
  0x25   : > { %s770_s26 = sand.u32 (!%p230_p11), 1, %s634_s18  }
  0x26   : > { %233 = sbr.rel (%p230_p11) target bundleno = 191 (0xbf), region = 36  ;;  %s466_s27 = sshll.u32 (!%p230_p11), %s770_s26, 3 }
  0x27   : > { %s236_s6 = scalar_lea.sflag (!%p230_p11), [#allocation4], %s770_s26  ;;  %s239_s7 = scalar_lea.vmem (!%p230_p11), [#allocation3], %s466_s27 }
  0x2b   : > { %621 = dma.done.wait (%p731_p8), %s236_s6, 128  }
  0x2c   : > { %623 = vsyncadd (%p731_p8), %s236_s6, 4294967168  ;;  %v653_v0 = vmov 0   ;;  %v287_v1 = vld [vmem:[%s825_s1] sm:$0xf]  ;;  %s282_s12 = sld [smem:[#allocation2]]  ;;  %v295_v8 = vlaneseq  ;;  %s474_s28 = sshll.u32 %s642_s20, 7 }
  0x2d   : > { %539 = vset.pattern.permute.xlu0 %v653_v0  ;;  %v301_v2 = vld [vmem:[%s826_s2] sm:$0xf]  ;;  %v654_v6 = vmov 839922192   ;;  %s271_s13 = scalar_lea.vmem [#allocation6], %s466_s27  ;;  %s333_s0 = scalar_lea.hbm %s828_s4, %s474_s28 }
  0x2e   : > { %290 = vperm.xlu0 %539, %v287_v1   ;;  %v283_v3 = vld [vmem:[%s239_s7] sm:$0xff]  ;;  %v293_v7 = vunpack.c.l.s4 %v654_v6  ;;  %v296_v10 = vshrl.u32 %v295_v8, 7  ;;  %s335_s14 = sshll.u32 %s271_s13, 4  ;;  %s317_s23 = scalar_lea.sflag [#allocation5], %s770_s26  ;;  %s336_s14 = int_to_ptr.vmem [resolvable:$true] %s335_s14 }
  0x2f   : > { %s570_s25 = scalar_lea.vmem %s336_s14, 128  ;;  %s655_s6 = smov [#allocation6]  }
  0x30   : > { %v294_v9 = vunpack.c.0.s8 %v293_v7  ;;  %p571_p8 = scmp.ne.s32.totalorder %s336_s14, %s570_s25  ;;  %s574_s7 = sshll.u32 %s655_s6, 4  ;;  %s575_s7 = int_to_ptr.vmem [resolvable:$false] %s574_s7 }
  0x31   : > { %s576_s20 = scalar_lea.vmem %s575_s7, 256  ;;  %p577_p0 = scmp.lt.s32.totalorder %s336_s14, %s575_s7 }
  0x32   : > { %304 = vperm.xlu0 %539, %v301_v2   ;;  %v284_v4 = vstv %s282_s12  ;;  %v297_v11 = vsub.s32 %v294_v9, %v296_v10  ;;  %p572_p11 = pnand %p571_p8, %p735_p9  ;;  %p578_p1 = scmp.lt.s32.totalorder %s576_s20, %s570_s25 }
  0x33   : > { %v285_v5 = vmul.f32 %v284_v4, %v283_v3 }
  0x34   : > { %p573_p12 = pneg %p572_p11  ;;  %p579_p2 = por %p578_p1, %p577_p0 }
  0x35   : > { %540 = vtanh.f32 %v285_v5 }
  0x36   : > { %p580_p3 = pnand %p579_p2, %p573_p12 }
  0x42   : > { %v541_v14 = vpop.eup %540 }
  0xa9   : > { %v291_v12 = vpop.permute.xlu0 %290 }
  0xaa   : > { %v298_v13 = vrot.slane %v291_v12, %v297_v11 }
  0xac   : > { %v300_v16 = vmul.f32 %v541_v14, %v298_v13 }
  0xad   : > { %v305_v15 = vpop.permute.xlu0 %304 }
  0xae   : > { %v312_v17 = vrot.slane %v305_v15, %v297_v11 }
  0xb0   : > { %v314_v18 = vadd.f32 %v312_v17, %v300_v16 }
  0xb2   : > { %315 = vst [vmem:[%s271_s13] sm:$0xff] %v314_v18 }
  0xb3   : > { %583 = shalt.err (!%p580_p3)
}
  0xb4   : > { %s584_s27 = scalar_lea.hbm %s333_s0, 128  ;;  %s588_s9 = scalar_lea.hbm %s828_s4, 256 }
  0xb5   : > { %p585_p5 = scmp.ne.s32.totalorder %s333_s0, %s584_s27  ;;  %p589_p10 = scmp.lt.s32.totalorder %s333_s0, %s828_s4 }
  0xb6   : > { %p590_p4 = scmp.lt.s32.totalorder %s588_s9, %s584_s27 }
  0xb7   : > { %p586_p6 = pnand %p585_p5, %p735_p9 }
  0xb8   : > { %p591_p13 = por %p590_p4, %p589_p10 }
  0xb9   : > { %p587_p7 = pneg %p586_p6 }
  0xbb   : > { %p592_p8 = pnand %p591_p13, %p587_p7 }
  0xbd   : > { %595 = shalt.err (!%p592_p8)
}
  0xbe   : > { %477 = dma.vmem_to_hbm [thread:$0]  (%p735_p9), %s336_s14, 128, %s333_s0, %s317_s23  }
  0xbf PF: > { %s347_s12 = sand.u32 1, %s630_s17   ;;  %p834_p11 = scmp.ne.s32.totalorder %s832_s5, 0 }
  0xc0   : > { %p835_p12 = scmp.ge.s32.totalorder %s650_s22, 2  ;;  %s348_s28 = scalar_lea.sflag [#allocation5], %s347_s12 }
  0xc2   : > { %p484_p0 = pnand %p835_p12, %p834_p11 }
  0xc4   : > { %p485_p1 = pneg %p484_p0 }
  0xc6   : > { %625 = dma.done.wait (%p485_p1), %s348_s28, 128  }
  0xc7   : > { %627 = vsyncadd (%p485_p1), %s348_s28, 4294967168  ;;  %s21_s22 = sadd.s32 1, %s650_s22   ;;  %s836_s17 = smov %s634_s18 }
  0xc8   : > { %p18_p2 = scmp.ge.s32.totalorder %s21_s22, 4   ;;  %s837_s18 = smov %s638_s19 }
  0xc9   : > { %s838_s19 = smov %s740_s30  ;;  %s839_s20 = smov %s646_s21 }
  0xca   : > { %s840_s21 = smov %s842_s24  ;;  %20 = sbr.rel (!%p18_p2) target bundleno = 8 (0x8), region = 87 }
  0xcf   :  { %353 = vsyncpa [#allocation4], 1 }
  0xd0   :  { %355 = vsyncpa [#allocation4 + $0x1], 1 }
  0xd1   :  { %356 = vsyncpa [#allocation5], 1 }
  0xd2   :  { %358 = vsyncpa [#allocation5 + $0x1], 1 }

</bundles_post_ra>
